<compile_context>
chip_gen: v5e
topology: v5e:2x2
jax: 0.10.0
libtpu: 0.0.40
codegen_flags: <defaults>
</compile_context>

<pallas_src>
import functools

import jax
import jax.numpy as jnp
from jax.experimental import pallas as pl
from jax.experimental.pallas import tpu as pltpu

_EPS = 1e-5
_VMEM_LIMIT = 32 * 1024 * 1024  # safe on v5e/v6e (128 MiB) and v7x (64 MiB)


def conv_stats_kernel(w_ref, p_ref, y_ref, s_ref):
    """One grid step of the conv pass.

    w_ref : (Cout, K)      weights, K = 9*Cin, resident across the grid
    p_ref : (K, TM)        im2col patch tile (pixels on lanes)
    y_ref : (Cout, TM)     conv output tile, lane-dense
    s_ref : (1, Cout, 2)   this tile's partial [sum, sum_of_squares] per channel
    """
    # Single MXU matmul, f32 accumulate.  No bias: it cancels in BatchNorm.
    acc = jnp.dot(w_ref[...], p_ref[...], preferred_element_type=jnp.float32)
    y_ref[...] = acc.astype(y_ref.dtype)

    # Per-tile partial BN statistics (lane reduction -> XLU, cheap).
    s_ref[0, :, 0:1] = jnp.sum(acc, axis=1, keepdims=True)
    s_ref[0, :, 1:2] = jnp.sum(acc * acc, axis=1, keepdims=True)


def bn_relu_kernel(y_ref, sc_ref, sh_ref, o_ref):
    """Lane-dense BN-affine + ReLU epilogue.

    y_ref  : (Cout, TM)  conv output tile
    sc_ref : (Cout, 1)   per-channel scale  = gamma * rsqrt(var + eps)
    sh_ref : (Cout, 1)   per-channel shift  = beta - mean * scale
    o_ref  : (Cout, TM)  output tile
    """
    y = y_ref[...].astype(jnp.float32)
    o = jnp.maximum(y * sc_ref[...] + sh_ref[...], 0.0)
    o_ref[...] = o.astype(o_ref.dtype)


def _pick_tm(m, target=512):
    """Largest 128-multiple tile <= target that divides m with >= 2 grid steps."""
    tm = min(target, m)
    tm -= tm % 128
    while tm >= 128:
        if m % tm == 0 and m // tm >= 2:
            return tm
        tm -= 128
    return m  # fallback: single full-extent block (always legal)


def _im2col_kmajor(x_nhwc):
    """Zero-pad(1) + im2col, laid out (K=9*Cin, M=N*H*W) so the conv matmul's
    natural output (Cout, M) is lane-dense."""
    n, h, w, cin = x_nhwc.shape
    xp = jnp.pad(x_nhwc, ((0, 0), (1, 1), (1, 1), (0, 0)))
    taps = [xp[:, dh:dh + h, dw:dw + w, :] for dh in range(3) for dw in range(3)]
    patches = jnp.stack(taps, axis=0)                 # (9, N, H, W, Cin)
    patches = jnp.transpose(patches, (0, 4, 1, 2, 3))  # (9, Cin, N, H, W)
    return patches.reshape(9 * cin, n * h * w)


def conv_bn_relu_layer(x_nhwc, w_t, gamma, beta):
    """One (conv3x3 pad=1 => BN(batch stats) => ReLU) layer.

    x_nhwc : (N, H, W, Cin)
    w_t    : (Cout, 9*Cin)   conv weights, K-order = (dh, dw, cin)
    gamma  : (Cout,)         BN gamma
    beta   : (Cout,)         BN beta
    returns (N, H, W, Cout)
    """
    n, h, w, cin = x_nhwc.shape
    cout, k = w_t.shape
    assert k == 9 * cin
    m = n * h * w

    patches = _im2col_kmajor(x_nhwc)          # (K, M)
    tm = _pick_tm(m)
    nt = m // tm

    cparams = pltpu.CompilerParams(
        dimension_semantics=("parallel",),
        vmem_limit_bytes=_VMEM_LIMIT,
    )

    # ---- pass 1: conv (single K=9*Cin matmul per tile) + partial BN stats ----
    y, part = pl.pallas_call(
        conv_stats_kernel,
        out_shape=(
            jax.ShapeDtypeStruct((cout, m), jnp.float32),   # conv output, lane-dense
            jax.ShapeDtypeStruct((nt, cout, 2), jnp.float32),  # per-tile [sum, sumsq]
        ),
        grid=(nt,),
        in_specs=[
            pl.BlockSpec((cout, k), lambda i: (0, 0)),   # weights stay resident
            pl.BlockSpec((k, tm), lambda i: (0, i)),
        ],
        out_specs=(
            pl.BlockSpec((cout, tm), lambda i: (0, i)),
            pl.BlockSpec((1, cout, 2), lambda i: (i, 0, 0)),
        ),
        compiler_params=cparams,
    )(w_t, patches)

    # ---- finalize BN stats (tiny (Cout,2) math, plain JAX) ----
    tot = jnp.sum(part, axis=0)                    # (Cout, 2)
    mean = tot[:, 0] / m
    var = tot[:, 1] / m - mean * mean              # biased variance (PyTorch BN)
    scale = gamma * jax.lax.rsqrt(var + _EPS)
    shift = beta - mean * scale

    # ---- pass 2: lane-dense affine + ReLU ----
    o = pl.pallas_call(
        bn_relu_kernel,
        out_shape=jax.ShapeDtypeStruct((cout, m), x_nhwc.dtype),
        grid=(nt,),
        in_specs=[
            pl.BlockSpec((cout, tm), lambda i: (0, i)),
            pl.BlockSpec((cout, 1), lambda i: (0, 0)),
            pl.BlockSpec((cout, 1), lambda i: (0, 0)),
        ],
        out_specs=pl.BlockSpec((cout, tm), lambda i: (0, i)),
        compiler_params=cparams,
    )(y, scale.reshape(cout, 1).astype(jnp.float32),
      shift.reshape(cout, 1).astype(jnp.float32))

    # (Cout, N*H*W) -> (N, H, W, Cout)  (wrapper-side layout plumbing)
    return jnp.transpose(o.reshape(cout, n, h, w), (1, 2, 3, 0))


def init_double_conv_params(key, in_ch, out_ch):
    """Deterministic synthetic parameters matching nn.Conv2d / nn.BatchNorm2d."""
    k1, k2, k3, k4 = jax.random.split(key, 4)
    # PyTorch Conv2d weight layout: (out_ch, in_ch, 3, 3).
    w1_oihw = 0.1 * jax.random.normal(k1, (out_ch, in_ch, 3, 3), jnp.float32)
    w2_oihw = 0.1 * jax.random.normal(k2, (out_ch, out_ch, 3, 3), jnp.float32)
    b1 = 0.1 * jax.random.normal(k3, (out_ch,), jnp.float32)
    b2 = 0.1 * jax.random.normal(k4, (out_ch,), jnp.float32)

    def kernel_mat(w_oihw):
        # (Cout, Cin, 3, 3) -> (Cout, 9*Cin) with K-order (dh, dw, cin)
        return jnp.transpose(w_oihw, (0, 2, 3, 1)).reshape(w_oihw.shape[0], -1)

    def hwio(w_oihw):
        return jnp.transpose(w_oihw, (2, 3, 1, 0))  # for the lax.conv reference

    return dict(
        # kernel-side params (bias omitted: cancelled exactly by BN mean sub)
        w1t=kernel_mat(w1_oihw), w2t=kernel_mat(w2_oihw),
        g1=jnp.ones((out_ch,), jnp.float32), be1=jnp.zeros((out_ch,), jnp.float32),
        g2=jnp.ones((out_ch,), jnp.float32), be2=jnp.zeros((out_ch,), jnp.float32),
        # reference-side params
        w1_hwio=hwio(w1_oihw), w2_hwio=hwio(w2_oihw), b1=b1, b2=b2,
    )


@jax.jit
def double_conv(x_nchw, params):
    # layout: NCHW (PyTorch) -> NHWC (kernel path) -> NCHW
    x = jnp.transpose(x_nchw, (0, 2, 3, 1))
    x = conv_bn_relu_layer(x, params["w1t"], params["g1"], params["be1"])
    x = conv_bn_relu_layer(x, params["w2t"], params["g2"], params["be2"])
    return jnp.transpose(x, (0, 3, 1, 2))


def _reference_double_conv(x_nchw, params):
    """Pure-JAX reference (lax.conv), faithful to the PyTorch module."""
    def layer(x, w_hwio, b, g, be):
        y = jax.lax.conv_general_dilated(
            x, w_hwio, window_strides=(1, 1), padding=((1, 1), (1, 1)),
            dimension_numbers=("NHWC", "HWIO", "NHWC"))
        y = y + b.reshape(1, 1, 1, -1)
        mean = jnp.mean(y, axis=(0, 1, 2), keepdims=True)
        var = jnp.mean(jnp.square(y - mean), axis=(0, 1, 2), keepdims=True)
        y = (y - mean) * jax.lax.rsqrt(var + _EPS)
        y = y * g.reshape(1, 1, 1, -1) + be.reshape(1, 1, 1, -1)
        return jnp.maximum(y, 0.0)

    x = jnp.transpose(x_nchw, (0, 2, 3, 1))
    x = layer(x, params["w1_hwio"], params["b1"], params["g1"], params["be1"])
    x = layer(x, params["w2_hwio"], params["b2"], params["g2"], params["be2"])
    return jnp.transpose(x, (0, 3, 1, 2))


if __name__ == "__main__":
    N, IN_CH, OUT_CH, HW = 2, 4, 8, 16

    key = jax.random.PRNGKey(0)
    kx, kp = jax.random.split(key)
    x = jax.random.normal(kx, (N, IN_CH, HW, HW), jnp.float32)  # NCHW like PyTorch
    params = init_double_conv_params(kp, IN_CH, OUT_CH)

    out = jax.block_until_ready(double_conv(x, params))
    assert out.shape == (N, OUT_CH, HW, HW), out.shape

    ref = jax.block_until_ready(_reference_double_conv(x, params))
    max_err = float(jnp.max(jnp.abs(out - ref)))
    assert jnp.allclose(out, ref, atol=1e-4, rtol=1e-4), max_err

    print("KERNEL_OK")
</pallas_src>

<mosaic_0001>
module attributes {stable_mosaic.version = 11 : i64} {
  func.func @bn_relu_kernel(%arg0: i32, %arg1: memref<8x256xf32, #tpu.memory_space<vmem>>, %arg2: memref<8x1xf32, #tpu.memory_space<vmem>>, %arg3: memref<8x1xf32, #tpu.memory_space<vmem>>, %arg4: memref<8x256xf32, #tpu.memory_space<vmem>>) attributes {dimension_semantics = [#tpu.dimension_semantics<parallel>], iteration_bounds = array<i64: 2>, scalar_prefetch = 0 : i64, scratch_operands = 0 : i64, tpu.core_type = #tpu.core_type<tc>, window_params = [{transform_indices = @transform_0, window_bounds = array<i64: 8, 256>}, {pipeline_mode = #tpu.pipeline_mode<synchronous>, transform_indices = @transform_1, window_bounds = array<i64: 8, 1>}, {pipeline_mode = #tpu.pipeline_mode<synchronous>, transform_indices = @transform_2, window_bounds = array<i64: 8, 1>}, {transform_indices = @transform_3, window_bounds = array<i64: 8, 256>}]} {
    %c0 = arith.constant 0 : index
    %c0_0 = arith.constant 0 : index
    %0 = vector.load %arg1[%c0, %c0_0] : memref<8x256xf32, #tpu.memory_space<vmem>>, vector<8x256xf32>
    %c0_1 = arith.constant 0 : index
    %c0_2 = arith.constant 0 : index
    %1 = vector.load %arg2[%c0_1, %c0_2] : memref<8x1xf32, #tpu.memory_space<vmem>>, vector<8x1xf32>
    %2 = vector.broadcast %1 : vector<8x1xf32> to vector<8x256xf32>
    %3 = arith.mulf %0, %2 : vector<8x256xf32>
    %c0_3 = arith.constant 0 : index
    %c0_4 = arith.constant 0 : index
    %4 = vector.load %arg3[%c0_3, %c0_4] : memref<8x1xf32, #tpu.memory_space<vmem>>, vector<8x1xf32>
    %5 = vector.broadcast %4 : vector<8x1xf32> to vector<8x256xf32>
    %6 = arith.addf %3, %5 : vector<8x256xf32>
    %cst = arith.constant 0.000000e+00 : f32
    %7 = vector.broadcast %cst : f32 to vector<8x256xf32>
    %8 = arith.maximumf %6, %7 : vector<8x256xf32>
    %c0_5 = arith.constant 0 : index
    %c0_6 = arith.constant 0 : index
    %9 = vector.load %arg4[%c0_5, %c0_6] : memref<8x256xf32, #tpu.memory_space<vmem>>, vector<8x256xf32>
    tpu.vector_store %arg4[%c0_5, %c0_6], %8 {strides = array<i32>} : memref<8x256xf32, #tpu.memory_space<vmem>>, vector<8x256xf32>,
    return
  }
  func.func @transform_0(%arg0: i32) -> (i32, i32) {
    %c0_i32 = arith.constant 0 : i32
    %c0_i32_0 = arith.constant 0 : i32
    return %c0_i32, %arg0 : i32, i32
  }
  func.func @transform_1(%arg0: i32) -> (i32, i32) {
    %c0_i32 = arith.constant 0 : i32
    %c0_i32_0 = arith.constant 0 : i32
    %c0_i32_1 = arith.constant 0 : i32
    return %c0_i32, %c0_i32_0 : i32, i32
  }
  func.func @transform_2(%arg0: i32) -> (i32, i32) {
    %c0_i32 = arith.constant 0 : i32
    %c0_i32_0 = arith.constant 0 : i32
    %c0_i32_1 = arith.constant 0 : i32
    return %c0_i32, %c0_i32_0 : i32, i32
  }
  func.func @transform_3(%arg0: i32) -> (i32, i32) {
    %c0_i32 = arith.constant 0 : i32
    %c0_i32_0 = arith.constant 0 : i32
    return %c0_i32, %arg0 : i32, i32
  }
}

module attributes {stable_mosaic.version = 11 : i64} {
  func.func @conv_stats_kernel(%arg0: i32, %arg1: memref<8x36xf32, #tpu.memory_space<vmem>>, %arg2: memref<36x256xf32, #tpu.memory_space<vmem>>, %arg3: memref<8x256xf32, #tpu.memory_space<vmem>>, %arg4: memref<1x8x2xf32, #tpu.memory_space<vmem>>) attributes {dimension_semantics = [#tpu.dimension_semantics<parallel>], iteration_bounds = array<i64: 2>, scalar_prefetch = 0 : i64, scratch_operands = 0 : i64, tpu.core_type = #tpu.core_type<tc>, window_params = [{pipeline_mode = #tpu.pipeline_mode<synchronous>, transform_indices = @transform_0, window_bounds = array<i64: 8, 36>}, {transform_indices = @transform_1, window_bounds = array<i64: 36, 256>}, {transform_indices = @transform_2, window_bounds = array<i64: 8, 256>}, {transform_indices = @transform_3, window_bounds = array<i64: 1, 8, 2>}]} {
    %c0 = arith.constant 0 : index
    %c0_0 = arith.constant 0 : index
    %0 = vector.load %arg1[%c0, %c0_0] : memref<8x36xf32, #tpu.memory_space<vmem>>, vector<8x36xf32>
    %c0_1 = arith.constant 0 : index
    %c0_2 = arith.constant 0 : index
    %1 = vector.load %arg2[%c0_1, %c0_2] : memref<36x256xf32, #tpu.memory_space<vmem>>, vector<36x256xf32>
    %cst = arith.constant dense<0.000000e+00> : vector<8x256xf32>
    %2 = tpu.matmul %0, %1, %cst {dimension_numbers = #tpu.dot_dimension_numbers<[1], [0], [0], [1], [0, 0, 1, 1], [], []>} : vector<8x36xf32>, vector<36x256xf32>, vector<8x256xf32> -> vector<8x256xf32>
    %c0_3 = arith.constant 0 : index
    %c0_4 = arith.constant 0 : index
    %3 = vector.load %arg3[%c0_3, %c0_4] : memref<8x256xf32, #tpu.memory_space<vmem>>, vector<8x256xf32>
    tpu.vector_store %arg3[%c0_3, %c0_4], %2 {strides = array<i32>} : memref<8x256xf32, #tpu.memory_space<vmem>>, vector<8x256xf32>,
    %cst_5 = arith.constant dense<0.000000e+00> : vector<8xf32>
    %4 = vector.multi_reduction <add>, %2, %cst_5 [1] : vector<8x256xf32> to vector<8xf32>
    %5 = vector.shape_cast %4 : vector<8xf32> to vector<8x1xf32>
    %c0_6 = arith.constant 0 : index
    %c0_7 = arith.constant 0 : index
    %c0_8 = arith.constant 0 : index
    %6 = vector.load %arg4[%c0_6, %c0_7, %c0_8] : memref<1x8x2xf32, #tpu.memory_space<vmem>>, vector<1x8x1xf32>
    %7 = vector.shape_cast %6 : vector<1x8x1xf32> to vector<8x1xf32>
    %8 = vector.shape_cast %5 : vector<8x1xf32> to vector<1x8x1xf32>
    tpu.vector_store %arg4[%c0_6, %c0_7, %c0_8], %8 {strides = array<i32>} : memref<1x8x2xf32, #tpu.memory_space<vmem>>, vector<1x8x1xf32>,
    %9 = arith.mulf %2, %2 : vector<8x256xf32>
    %cst_9 = arith.constant dense<0.000000e+00> : vector<8xf32>
    %10 = vector.multi_reduction <add>, %9, %cst_9 [1] : vector<8x256xf32> to vector<8xf32>
    %11 = vector.shape_cast %10 : vector<8xf32> to vector<8x1xf32>
    %c0_10 = arith.constant 0 : index
    %c0_11 = arith.constant 0 : index
    %c1 = arith.constant 1 : index
    %12 = vector.load %arg4[%c0_10, %c0_11, %c1] : memref<1x8x2xf32, #tpu.memory_space<vmem>>, vector<1x8x1xf32>
    %13 = vector.shape_cast %12 : vector<1x8x1xf32> to vector<8x1xf32>
    %14 = vector.shape_cast %11 : vector<8x1xf32> to vector<1x8x1xf32>
    tpu.vector_store %arg4[%c0_10, %c0_11, %c1], %14 {strides = array<i32>} : memref<1x8x2xf32, #tpu.memory_space<vmem>>, vector<1x8x1xf32>,
    return
  }
  func.func @transform_0(%arg0: i32) -> (i32, i32) {
    %c0_i32 = arith.constant 0 : i32
    %c0_i32_0 = arith.constant 0 : i32
    %c0_i32_1 = arith.constant 0 : i32
    return %c0_i32, %c0_i32_0 : i32, i32
  }
  func.func @transform_1(%arg0: i32) -> (i32, i32) {
    %c0_i32 = arith.constant 0 : i32
    %c0_i32_0 = arith.constant 0 : i32
    return %c0_i32, %arg0 : i32, i32
  }
  func.func @transform_2(%arg0: i32) -> (i32, i32) {
    %c0_i32 = arith.constant 0 : i32
    %c0_i32_0 = arith.constant 0 : i32
    return %c0_i32, %arg0 : i32, i32
  }
  func.func @transform_3(%arg0: i32) -> (i32, i32, i32) {
    %c0_i32 = arith.constant 0 : i32
    %c0_i32_0 = arith.constant 0 : i32
    %c0_i32_1 = arith.constant 0 : i32
    return %arg0, %c0_i32, %c0_i32_0 : i32, i32, i32
  }
}

module attributes {stable_mosaic.version = 11 : i64} {
  func.func @conv_stats_kernel(%arg0: i32, %arg1: memref<8x72xf32, #tpu.memory_space<vmem>>, %arg2: memref<72x256xf32, #tpu.memory_space<vmem>>, %arg3: memref<8x256xf32, #tpu.memory_space<vmem>>, %arg4: memref<1x8x2xf32, #tpu.memory_space<vmem>>) attributes {dimension_semantics = [#tpu.dimension_semantics<parallel>], iteration_bounds = array<i64: 2>, scalar_prefetch = 0 : i64, scratch_operands = 0 : i64, tpu.core_type = #tpu.core_type<tc>, window_params = [{pipeline_mode = #tpu.pipeline_mode<synchronous>, transform_indices = @transform_0, window_bounds = array<i64: 8, 72>}, {transform_indices = @transform_1, window_bounds = array<i64: 72, 256>}, {transform_indices = @transform_2, window_bounds = array<i64: 8, 256>}, {transform_indices = @transform_3, window_bounds = array<i64: 1, 8, 2>}]} {
    %c0 = arith.constant 0 : index
    %c0_0 = arith.constant 0 : index
    %0 = vector.load %arg1[%c0, %c0_0] : memref<8x72xf32, #tpu.memory_space<vmem>>, vector<8x72xf32>
    %c0_1 = arith.constant 0 : index
    %c0_2 = arith.constant 0 : index
    %1 = vector.load %arg2[%c0_1, %c0_2] : memref<72x256xf32, #tpu.memory_space<vmem>>, vector<72x256xf32>
    %cst = arith.constant dense<0.000000e+00> : vector<8x256xf32>
    %2 = tpu.matmul %0, %1, %cst {dimension_numbers = #tpu.dot_dimension_numbers<[1], [0], [0], [1], [0, 0, 1, 1], [], []>} : vector<8x72xf32>, vector<72x256xf32>, vector<8x256xf32> -> vector<8x256xf32>
    %c0_3 = arith.constant 0 : index
    %c0_4 = arith.constant 0 : index
    %3 = vector.load %arg3[%c0_3, %c0_4] : memref<8x256xf32, #tpu.memory_space<vmem>>, vector<8x256xf32>
    tpu.vector_store %arg3[%c0_3, %c0_4], %2 {strides = array<i32>} : memref<8x256xf32, #tpu.memory_space<vmem>>, vector<8x256xf32>,
    %cst_5 = arith.constant dense<0.000000e+00> : vector<8xf32>
    %4 = vector.multi_reduction <add>, %2, %cst_5 [1] : vector<8x256xf32> to vector<8xf32>
    %5 = vector.shape_cast %4 : vector<8xf32> to vector<8x1xf32>
    %c0_6 = arith.constant 0 : index
    %c0_7 = arith.constant 0 : index
    %c0_8 = arith.constant 0 : index
    %6 = vector.load %arg4[%c0_6, %c0_7, %c0_8] : memref<1x8x2xf32, #tpu.memory_space<vmem>>, vector<1x8x1xf32>
    %7 = vector.shape_cast %6 : vector<1x8x1xf32> to vector<8x1xf32>
    %8 = vector.shape_cast %5 : vector<8x1xf32> to vector<1x8x1xf32>
    tpu.vector_store %arg4[%c0_6, %c0_7, %c0_8], %8 {strides = array<i32>} : memref<1x8x2xf32, #tpu.memory_space<vmem>>, vector<1x8x1xf32>,
    %9 = arith.mulf %2, %2 : vector<8x256xf32>
    %cst_9 = arith.constant dense<0.000000e+00> : vector<8xf32>
    %10 = vector.multi_reduction <add>, %9, %cst_9 [1] : vector<8x256xf32> to vector<8xf32>
    %11 = vector.shape_cast %10 : vector<8xf32> to vector<8x1xf32>
    %c0_10 = arith.constant 0 : index
    %c0_11 = arith.constant 0 : index
    %c1 = arith.constant 1 : index
    %12 = vector.load %arg4[%c0_10, %c0_11, %c1] : memref<1x8x2xf32, #tpu.memory_space<vmem>>, vector<1x8x1xf32>
    %13 = vector.shape_cast %12 : vector<1x8x1xf32> to vector<8x1xf32>
    %14 = vector.shape_cast %11 : vector<8x1xf32> to vector<1x8x1xf32>
    tpu.vector_store %arg4[%c0_10, %c0_11, %c1], %14 {strides = array<i32>} : memref<1x8x2xf32, #tpu.memory_space<vmem>>, vector<1x8x1xf32>,
    return
  }
  func.func @transform_0(%arg0: i32) -> (i32, i32) {
    %c0_i32 = arith.constant 0 : i32
    %c0_i32_0 = arith.constant 0 : i32
    %c0_i32_1 = arith.constant 0 : i32
    return %c0_i32, %c0_i32_0 : i32, i32
  }
  func.func @transform_1(%arg0: i32) -> (i32, i32) {
    %c0_i32 = arith.constant 0 : i32
    %c0_i32_0 = arith.constant 0 : i32
    return %c0_i32, %arg0 : i32, i32
  }
  func.func @transform_2(%arg0: i32) -> (i32, i32) {
    %c0_i32 = arith.constant 0 : i32
    %c0_i32_0 = arith.constant 0 : i32
    return %c0_i32, %arg0 : i32, i32
  }
  func.func @transform_3(%arg0: i32) -> (i32, i32, i32) {
    %c0_i32 = arith.constant 0 : i32
    %c0_i32_0 = arith.constant 0 : i32
    %c0_i32_1 = arith.constant 0 : i32
    return %arg0, %c0_i32, %c0_i32_0 : i32, i32, i32
  }
}

</mosaic_0001>

<bundles_post_ra>
// kernel: double_conv.5
= control target key start
LH: loop header
LB: loop body
LE: loop exit
PB: predicated region body
PF: predicated region fallthrough
CT: control target
= control target key end

     0   :  { %s302_s12 = smov 0   ;;  %s325_s0 = inlined_call_operand.vmem [shape: f32[8,512], index: 0, kind: input, shape index: {}]   ;;  %s326_s1 = inlined_call_operand.vmem [shape: f32[8,1], index: 1, kind: input, shape index: {}]   ;;  %s327_s2 = inlined_call_operand.vmem [shape: f32[8,1], index: 2, kind: input, shape index: {}]   ;;  %s328_s3 = inlined_call_operand.vmem [shape: f32[8,512], index: 3, kind: output, shape index: {}]  }
   0x1 LB: > { %s252_s13 = sadd.s32 4294967295, %s279_s12   ;;  %p256_p0 = scmp.ge.s32.totalorder %s279_s12, 1  ;;  %s279_s12 = sphi %s302_s12, %s13_s12  }
   0x2   : > { %p138_p1 = scmp.lt.s32.totalorder %s279_s12, 3 }
   0x4   : > { %p139_p2 = pnand %p256_p0, %p138_p1 }
   0x5   : > { %s257_s18 = sshll.u32 (!%p139_p2), %s252_s13, 1 }
   0x6   : > { %142 = sbr.rel (%p139_p2) target bundleno = 142 (0x8e), region = 32  ;;  %p163_p3 = scmp.lt.s32.totalorder (!%p139_p2), %s257_s18, 3 }
   0xb   : > { %v176_v0 = vld [vmem:[%s326_s1] sm:$0xff]  ;;  %v281_v1 = vmov 0   ;;  %s330_s18 = smov (!%p163_p3, %s257_s18), 3 }
   0xc   : > { %272 = vset.pattern.permute.xlu0 %v281_v1  ;;  %v184_v2 = vld [vmem:[%s327_s2] sm:$0xff]  ;;  %s258_s19 = sshll.u32 %s330_s18, 3 }
   0xd   : > { %179 = vperm.xlu0 %272, %v176_v0   ;;  %s166_s22 = scalar_lea.vmem %s325_s0, %s258_s19  ;;  %s172_s25 = scalar_lea.vmem %s328_s3, %s258_s19 }
   0xe   : > { %v174_v4 = vld [vmem:[%s166_s22] sm:$0xff]  ;;  %v175_v5 = vld [vmem:[%s166_s22 + $0x8] sm:$0xff] }
  0x15   : > { %187 = vperm.xlu0 %272, %v184_v2  }
  0x7f   : > { %v180_v3 = vpop.permute.xlu0 %179 }
  0x80   : > { %v182_v6 = vmul.f32 %v180_v3, %v174_v4  ;;  %v183_v7 = vmul.f32 %v180_v3, %v175_v5 }
  0x87   : > { %v188_v8 = vpop.permute.xlu0 %187 }
  0x88   : > { %v190_v9 = vadd.f32 %v188_v8, %v182_v6  ;;  %v191_v10 = vadd.f32 %v188_v8, %v183_v7 }
  0x8a   : > { %v192_v11 = vmax.f32 %v190_v9, 0.0  ;;  %v193_v12 = vmax.f32 %v191_v10, 0.0 }
  0x8c   : > { %194 = vst [vmem:[%s172_s25] sm:$0xff] %v192_v11 }
  0x8d   : > { %195 = vst [vmem:[%s172_s25 + $0x8] sm:$0xff] %v193_v12 }
  0x8e PF: > { %s13_s12 = sadd.s32 1, %s279_s12  }
  0x8f   : > { %p10_p4 = scmp.ge.s32.totalorder %s13_s12, 4  }
  0x91   :  { %12 = sbr.rel (!%p10_p4) target bundleno = 1 (0x1), region = 62 }

// kernel: double_conv.4
= control target key start
LH: loop header
LB: loop body
LE: loop exit
PB: predicated region body
PF: predicated region fallthrough
CT: control target
= control target key end

     0   :  { %s478_s12 = smov 0   ;;  %s480_s13 = smov 0   ;;  %s539_s0 = inlined_call_operand.vmem [shape: f32[8,36], index: 0, kind: input, shape index: {}]   ;;  %s540_s1 = inlined_call_operand.vmem [shape: f32[36,512], index: 1, kind: input, shape index: {}]   ;;  %s541_s2 = inlined_call_operand.vmem [shape: f32[8,512], index: 2, kind: output, shape index: {0}]   ;;  %s542_s3 = inlined_call_operand.vmem [shape: f32[2,8,2], index: 3, kind: output, shape index: {1}]  }
   0x1   :  { %s482_s14 = smov 0  }
   0x2 LB: > { %s494_s15 = sadd.s32 4294967295, %s456_s14   ;;  %s497_s16 = sadd.s32 1, %s456_s14   ;;  %s456_s14 = sphi %s482_s14, %s545_s14   ;;  %s452_s13 = sphi %s480_s13, %s544_s13   ;;  %s448_s12 = sphi %s478_s12, %s543_s12  }
   0x3   : > { %s39_s17 = ssub.s32 %s456_s14, %s497_s16  ;;  %s42_s18 = sadd.s32 1, %s452_s13 }
   0x4   : > { %p40_p0 = scmp.eq.s32.totalorder %s39_s17, 0  ;;  %p49_p1 = scmp.ne.s32.totalorder %s452_s13, %s448_s12 }
   0x5   : > { %p50_p2 = scmp.eq.s32.totalorder %s456_s14, 0  ;;  %p394_p4 = scmp.ge.s32.totalorder %s456_s14, 2 }
   0x6   : > { %s506_s19 = scalar_select %p40_p0, %s452_s13, %s42_s18  }
   0x7   : > { %p51_p3 = por %p50_p2, %p49_p1  ;;  %130 = sbr.rel (%p394_p4) target bundleno = 26 (0x1a), region = 20 }
   0xc   : > { %133 = sbr.rel (!%p51_p3) target bundleno = 26 (0x1a), region = 24  ;;  %s135_s20 = sand.u32 (%p51_p3), 1, %s452_s13  }
   0xd   : > { %s407_s21 = sshll.u32 (%p51_p3), %s456_s14, 4  ;;  %s408_s22 = smul.u32 (%p51_p3), 80, %s135_s20 }
   0xe   : > { %s140_s25 = scalar_lea.vmem (%p51_p3), %s540_s1, %s407_s21 }
   0xf   : > { %v153_v0 = vld [vmem:[%s140_s25] sm:$0xff] (%p51_p3)  ;;  %v155_v1 = vld [vmem:[%s140_s25 + $0x8] sm:$0xff] (%p51_p3)  ;;  %s137_s26 = scalar_lea.vmem (%p51_p3), [#allocation2], %s408_s22 }
  0x10   : > { %v157_v2 = vld [vmem:[%s140_s25 + $0x20] sm:$0xff] (%p51_p3)  ;;  %154 = vst [vmem:[%s137_s26] sm:$0xff] (%p51_p3), %v153_v0  ;;  %v159_v3 = vld [vmem:[%s140_s25 + $0x28] sm:$0xff] (%p51_p3) }
  0x11   : > { %156 = vst [vmem:[%s137_s26 + $0x8] sm:$0xff] %v155_v1  ;;  %v161_v4 = vld [vmem:[%s140_s25 + $0x40] sm:$0xff]  ;;  %v163_v5 = vld [vmem:[%s140_s25 + $0x48] sm:$0xff] }
  0x12   : > { %158 = vst [vmem:[%s137_s26 + $0x10] sm:$0xff] %v157_v2  ;;  %v165_v6 = vld [vmem:[%s140_s25 + $0x60] sm:$0xff]  ;;  %v167_v7 = vld [vmem:[%s140_s25 + $0x68] sm:$0xff] }
  0x13   : > { %160 = vst [vmem:[%s137_s26 + $0x18] sm:$0xff] %v159_v3  ;;  %v169_v8 = vld [vmem:[%s140_s25 + $0x80] sm:$0xff]  ;;  %v171_v9 = vld [vmem:[%s140_s25 + $0x88] sm:$0xff] }
  0x14   : > { %162 = vst [vmem:[%s137_s26 + $0x20] sm:$0xff] %v161_v4 }
  0x15   : > { %164 = vst [vmem:[%s137_s26 + $0x28] sm:$0xff] %v163_v5 }
  0x16   : > { %166 = vst [vmem:[%s137_s26 + $0x30] sm:$0xff] %v165_v6 }
  0x17   : > { %168 = vst [vmem:[%s137_s26 + $0x38] sm:$0xff] %v167_v7 }
  0x18   : > { %170 = vst [vmem:[%s137_s26 + $0x40] sm:$0xff] %v169_v8 }
  0x19   : > { %172 = vst [vmem:[%s137_s26 + $0x48] sm:$0xff] %v171_v9 }
  0x1a PF: > { %p397_p5 = scmp.ge.s32.totalorder %s456_s14, 1  ;;  %p177_p6 = scmp.lt.s32.totalorder %s456_s14, 3 }
  0x1c   : > { %p178_p7 = pnand %p397_p5, %p177_p6 }
  0x1d   : > { %s184_s27 = sand.u32 (!%p178_p7), 1, %s448_s12   ;;  %s398_s5 = sshll.u32 (!%p178_p7), %s494_s15, 1 }
  0x1e   : > { %181 = sbr.rel (%p178_p7) target bundleno = 298 (0x12a), region = 47  ;;  %p213_p8 = scmp.lt.s32.totalorder (!%p178_p7), %s398_s5, 3 }
  0x1f   : > { %s409_s28 = smul.u32 (!%p178_p7), 80, %s184_s27  ;;  %p218_p9 = scmp.lt.s32.totalorder (!%p178_p7), %s494_s15, 1 }
  0x21   : > { %s186_s29 = scalar_lea.vmem (!%p178_p7), [#allocation2], %s409_s28 }
  0x23   : > { %vm237_vm0 = vcmask 1043456   ;;  %v231_v10 = vld [vmem:[%s186_s29 + $0x40] sm:$0xf]  ;;  %v232_v11 = vld [vmem:[%s186_s29 + $0x48] sm:$0xf]  ;;  %v229_v12 = vld [vmem:[%s186_s29 + $0x30] sm:$0xff] }
  0x24   : > { %401 = vmatpush.msk.msra.mxu0 %vm237_vm0, %v231_v10  ;;  %403 = vmatpush.msk.msra.mxu1 %vm237_vm0, %v232_v11  ;;  %v230_v13 = vld [vmem:[%s186_s29 + $0x38] sm:$0xff]  ;;  %v227_v14 = vld [vmem:[%s186_s29 + $0x20] sm:$0xff]  ;;  %v228_v15 = vld [vmem:[%s186_s29 + $0x28] sm:$0xff]  ;;  %vm233_vm1 = vcmask 293888   ;;  %s547_s5 = smov (!%p213_p8, %s398_s5), 3  ;;  %s549_s15 = smov (!%p218_p9, %s494_s15), 1 }
  0x25   : > { %v225_v16 = vld [vmem:[%s186_s29 + $0x10] sm:$0xff]  ;;  %v226_v17 = vld [vmem:[%s186_s29 + $0x18] sm:$0xff]  ;;  %v223_v18 = vld [vmem:[%s186_s29] sm:$0xff]  ;;  %s399_s6 = sshll.u32 %s547_s5, 3  ;;  %s400_s10 = sshll.u32 %s549_s15, 3  ;;  %vm289_vm2 = vcmask 7168  }
  0x26   : > { %256 = vmatpush.msra.mxu0 %v229_v12  ;;  %276 = vmatpush.msra.mxu1 %v230_v13  ;;  %v224_v19 = vld [vmem:[%s186_s29 + $0x8] sm:$0xff]  ;;  %v222_v20 = vld [vmem:[%s539_s0] sm:$0xff]  ;;  %s216_s9 = scalar_lea.vmem %s541_s2, %s399_s6  ;;  %s221_s14 = scalar_lea.vmem %s542_s3, %s400_s10  ;;  %vm296_vm3 = vcmask 15368  }
  0x28   : > { %257 = vmatpush.msra.mxu0 %v227_v14  ;;  %277 = vmatpush.msra.mxu1 %v228_v15 }
  0x2a   : > { %258 = vmatpush.msra.mxu0 %v225_v16  ;;  %278 = vmatpush.msra.mxu1 %v226_v17 }
  0x2c   : > { %259 = vmatpush.msra.mxu0 %v223_v18  ;;  %279 = vmatpush.msra.mxu1 %v224_v19 }
  0x2d   : > { %402 = vmatmul.msk.f32.vlgmr.msra.gmra.mxu0 %vm233_vm1, %v222_v20  ;;  %404 = vmatmul.msk.f32.vlgmr.msra.gmra.mxu1 %vm233_vm1, %v222_v20 }
  0xaa   : > { %v261_v21 = vpop.f32.mrf.mxu0  ;;  %v281_v22 = vpop.f32.mrf.mxu1 }
  0xab   : > { %284 = vst [vmem:[%s216_s9] sm:$0xff] %v261_v21  ;;  %v286_v23 = vadd.f32 %v281_v22, %v261_v21  ;;  %v291_v24 = vmul.f32 %v261_v21, %v261_v21  ;;  %v292_v25 = vmul.f32 %v281_v22, %v281_v22 }
  0xac   : > { %285 = vst [vmem:[%s216_s9 + $0x8] sm:$0xff] %v281_v22 }
  0xad   : > { %287 = vadd.xlane.f32.xlu0 %v286_v23  ;;  %v293_v26 = vadd.f32 %v292_v25, %v291_v24 }
  0xb5   : > { %294 = vadd.xlane.f32.xlu0 %v293_v26 }
 0x120   : > { %v288_v27 = vpop.xlane.xlu0 %287 }
 0x121   : > { %290 = vst.msk [vmem:[%s221_s14] sm:$0xff] %vm289_vm2, %v288_v27 }
 0x128   : > { %v295_v28 = vpop.xlane.xlu0 %294 }
 0x129   : > { %297 = vst.msk [vmem:[%s221_s14] sm:$0xff] %vm296_vm3, %v295_v28 }
 0x12a PF: > { %p11_p10 = scmp.ge.s32.totalorder %s497_s16, 4   ;;  %s543_s12 = smov %s452_s13 }
 0x12b   : > { %s544_s13 = smov %s506_s19  ;;  %s545_s14 = smov %s497_s16 }
 0x12c   :  { %13 = sbr.rel (!%p11_p10) target bundleno = 2 (0x2), region = 98 }

// kernel: double_conv.6
= control target key start
LH: loop header
LB: loop body
LE: loop exit
PB: predicated region body
PF: predicated region fallthrough
CT: control target
= control target key end

     0   :  { %s493_s12 = smov 0   ;;  %s495_s13 = smov 0   ;;  %s614_s0 = inlined_call_operand.vmem [shape: f32[8,72], index: 0, kind: input, shape index: {}]   ;;  %s615_s1 = inlined_call_operand.vmem [shape: f32[72,512], index: 1, kind: input, shape index: {}]   ;;  %s616_s2 = inlined_call_operand.vmem [shape: f32[8,512], index: 2, kind: output, shape index: {0}]   ;;  %s617_s3 = inlined_call_operand.vmem [shape: f32[2,8,2], index: 3, kind: output, shape index: {1}]  }
   0x1   :  { %s497_s14 = smov 0  }
   0x2 LB: > { %s509_s15 = sadd.s32 4294967295, %s471_s14   ;;  %s512_s16 = sadd.s32 1, %s471_s14   ;;  %s471_s14 = sphi %s497_s14, %s620_s14   ;;  %s467_s13 = sphi %s495_s13, %s619_s13   ;;  %s463_s12 = sphi %s493_s12, %s618_s12  }
   0x3   : > { %s39_s17 = ssub.s32 %s471_s14, %s512_s16  ;;  %s42_s18 = sadd.s32 1, %s467_s13 }
   0x4   : > { %p40_p0 = scmp.eq.s32.totalorder %s39_s17, 0  ;;  %p49_p1 = scmp.ne.s32.totalorder %s467_s13, %s463_s12 }
   0x5   : > { %p50_p2 = scmp.eq.s32.totalorder %s471_s14, 0  ;;  %p411_p4 = scmp.ge.s32.totalorder %s471_s14, 2 }
   0x6   : > { %s521_s19 = scalar_select %p40_p0, %s467_s13, %s42_s18  }
   0x7   : > { %p51_p3 = por %p50_p2, %p49_p1  ;;  %130 = sbr.rel (%p411_p4) target bundleno = 34 (0x22), region = 20 }
   0xc   : > { %133 = sbr.rel (!%p51_p3) target bundleno = 34 (0x22), region = 24  ;;  %s135_s20 = sand.u32 (%p51_p3), 1, %s467_s13  }
   0xd   : > { %s422_s21 = sshll.u32 (%p51_p3), %s471_s14, 4  ;;  %s423_s22 = smul.u32 (%p51_p3), 144, %s135_s20 }
   0xe   : > { %s529_s25 = scalar_lea.vmem (%p51_p3), %s615_s1, %s422_s21 }
   0xf   : > { %v153_v0 = vld [vmem:[%s529_s25] sm:$0xff] (%p51_p3)  ;;  %v155_v1 = vld [vmem:[%s529_s25 + $0x8] sm:$0xff] (%p51_p3)  ;;  %s534_s26 = scalar_lea.vmem (%p51_p3), [#allocation2], %s423_s22 }
  0x10   : > { %v157_v2 = vld [vmem:[%s529_s25 + $0x20] sm:$0xff] (%p51_p3)  ;;  %154 = vst [vmem:[%s534_s26] sm:$0xff] (%p51_p3), %v153_v0  ;;  %v159_v3 = vld [vmem:[%s529_s25 + $0x28] sm:$0xff] (%p51_p3) }
  0x11   : > { %156 = vst [vmem:[%s534_s26 + $0x8] sm:$0xff] %v155_v1  ;;  %v161_v4 = vld [vmem:[%s529_s25 + $0x40] sm:$0xff]  ;;  %v163_v5 = vld [vmem:[%s529_s25 + $0x48] sm:$0xff] }
  0x12   : > { %158 = vst [vmem:[%s534_s26 + $0x10] sm:$0xff] %v157_v2  ;;  %v165_v6 = vld [vmem:[%s529_s25 + $0x60] sm:$0xff]  ;;  %v167_v7 = vld [vmem:[%s529_s25 + $0x68] sm:$0xff] }
  0x13   : > { %160 = vst [vmem:[%s534_s26 + $0x18] sm:$0xff] %v159_v3  ;;  %v169_v8 = vld [vmem:[%s529_s25 + $0x80] sm:$0xff]  ;;  %v171_v9 = vld [vmem:[%s529_s25 + $0x88] sm:$0xff] }
  0x14   : > { %162 = vst [vmem:[%s534_s26 + $0x20] sm:$0xff] %v161_v4  ;;  %v173_v10 = vld [vmem:[%s529_s25 + $0xa0] sm:$0xff]  ;;  %v175_v11 = vld [vmem:[%s529_s25 + $0xa8] sm:$0xff] }
  0x15   : > { %164 = vst [vmem:[%s534_s26 + $0x28] sm:$0xff] %v163_v5  ;;  %v177_v12 = vld [vmem:[%s529_s25 + $0xc0] sm:$0xff]  ;;  %v179_v13 = vld [vmem:[%s529_s25 + $0xc8] sm:$0xff] }
  0x16   : > { %166 = vst [vmem:[%s534_s26 + $0x30] sm:$0xff] %v165_v6  ;;  %v181_v14 = vld [vmem:[%s529_s25 + $0xe0] sm:$0xff]  ;;  %v183_v15 = vld [vmem:[%s529_s25 + $0xe8] sm:$0xff] }
  0x17   : > { %168 = vst [vmem:[%s534_s26 + $0x38] sm:$0xff] %v167_v7  ;;  %v185_v16 = vld [vmem:[%s529_s25 + $0x100] sm:$0xff]  ;;  %v187_v17 = vld [vmem:[%s529_s25 + $0x108] sm:$0xff] }
  0x18   : > { %170 = vst [vmem:[%s534_s26 + $0x40] sm:$0xff] %v169_v8 }
  0x19   : > { %172 = vst [vmem:[%s534_s26 + $0x48] sm:$0xff] %v171_v9 }
  0x1a   : > { %174 = vst [vmem:[%s534_s26 + $0x50] sm:$0xff] %v173_v10 }
  0x1b   : > { %176 = vst [vmem:[%s534_s26 + $0x58] sm:$0xff] %v175_v11 }
  0x1c   : > { %178 = vst [vmem:[%s534_s26 + $0x60] sm:$0xff] %v177_v12 }
  0x1d   : > { %180 = vst [vmem:[%s534_s26 + $0x68] sm:$0xff] %v179_v13 }
  0x1e   : > { %182 = vst [vmem:[%s534_s26 + $0x70] sm:$0xff] %v181_v14 }
  0x1f   : > { %184 = vst [vmem:[%s534_s26 + $0x78] sm:$0xff] %v183_v15 }
  0x20   : > { %186 = vst [vmem:[%s534_s26 + $0x80] sm:$0xff] %v185_v16 }
  0x21   : > { %188 = vst [vmem:[%s534_s26 + $0x88] sm:$0xff] %v187_v17 }
  0x22 PF: > { %p414_p5 = scmp.ge.s32.totalorder %s471_s14, 1  ;;  %p193_p6 = scmp.lt.s32.totalorder %s471_s14, 3 }
  0x24   : > { %p194_p7 = pnand %p414_p5, %p193_p6 }
  0x25   : > { %s200_s27 = sand.u32 (!%p194_p7), 1, %s463_s12   ;;  %s415_s5 = sshll.u32 (!%p194_p7), %s509_s15, 1 }
  0x26   : > { %197 = sbr.rel (%p194_p7) target bundleno = 314 (0x13a), region = 47  ;;  %p229_p8 = scmp.lt.s32.totalorder (!%p194_p7), %s415_s5, 3 }
  0x27   : > { %s424_s28 = smul.u32 (!%p194_p7), 144, %s200_s27  ;;  %p234_p9 = scmp.lt.s32.totalorder (!%p194_p7), %s509_s15, 1 }
  0x29   : > { %s572_s29 = scalar_lea.vmem (!%p194_p7), [#allocation2], %s424_s28 }
  0x2b   : > { %v255_v18 = vld [vmem:[%s572_s29 + $0x80] sm:$0xff]  ;;  %v256_v19 = vld [vmem:[%s572_s29 + $0x88] sm:$0xff]  ;;  %v253_v20 = vld [vmem:[%s572_s29 + $0x70] sm:$0xff]  ;;  %vm257_vm0 = vcmask 588800   ;;  %s622_s5 = smov (!%p229_p8, %s415_s5), 3  ;;  %s624_s15 = smov (!%p234_p9, %s509_s15), 1 }
  0x2c   : > { %268 = vmatpush.msra.mxu0 %v255_v18  ;;  %288 = vmatpush.msra.mxu1 %v256_v19  ;;  %v254_v21 = vld [vmem:[%s572_s29 + $0x78] sm:$0xff]  ;;  %v251_v22 = vld [vmem:[%s572_s29 + $0x60] sm:$0xff]  ;;  %v252_v23 = vld [vmem:[%s572_s29 + $0x68] sm:$0xff]  ;;  %s416_s6 = sshll.u32 %s622_s5, 3  ;;  %s417_s10 = sshll.u32 %s624_s15, 3  ;;  %vm306_vm1 = vcmask 7168  }
  0x2d   : > { %v249_v24 = vld [vmem:[%s572_s29 + $0x50] sm:$0xff]  ;;  %v250_v25 = vld [vmem:[%s572_s29 + $0x58] sm:$0xff]  ;;  %v247_v26 = vld [vmem:[%s572_s29 + $0x40] sm:$0xff]  ;;  %s232_s9 = scalar_lea.vmem %s616_s2, %s416_s6  ;;  %s237_s14 = scalar_lea.vmem %s617_s3, %s417_s10  ;;  %vm313_vm2 = vcmask 15368  }
  0x2e   : > { %269 = vmatpush.msra.mxu0 %v253_v20  ;;  %289 = vmatpush.msra.mxu1 %v254_v21  ;;  %v248_v27 = vld [vmem:[%s572_s29 + $0x48] sm:$0xff]  ;;  %v245_v28 = vld [vmem:[%s572_s29 + $0x30] sm:$0xff]  ;;  %v246_v29 = vld [vmem:[%s572_s29 + $0x38] sm:$0xff] }
  0x2f   : > { %v243_v30 = vld [vmem:[%s572_s29 + $0x20] sm:$0xff]  ;;  %v244_v31 = vld [vmem:[%s572_s29 + $0x28] sm:$0xff]  ;;  %v241_v32 = vld [vmem:[%s572_s29 + $0x10] sm:$0xff] }
  0x30   : > { %270 = vmatpush.msra.mxu0 %v251_v22  ;;  %290 = vmatpush.msra.mxu1 %v252_v23  ;;  %v242_v33 = vld [vmem:[%s572_s29 + $0x18] sm:$0xff]  ;;  %v239_v34 = vld [vmem:[%s572_s29] sm:$0xff]  ;;  %v240_v35 = vld [vmem:[%s572_s29 + $0x8] sm:$0xff] }
  0x31   : > { %v238_v36 = vld [vmem:[%s614_s0] sm:$0xff] }
  0x32   : > { %271 = vmatpush.msra.mxu0 %v249_v24  ;;  %291 = vmatpush.msra.mxu1 %v250_v25 }
  0x34   : > { %272 = vmatpush.msra.mxu0 %v247_v26  ;;  %292 = vmatpush.msra.mxu1 %v248_v27 }
  0x36   : > { %273 = vmatpush.msra.mxu0 %v245_v28  ;;  %293 = vmatpush.msra.mxu1 %v246_v29 }
  0x38   : > { %274 = vmatpush.msra.mxu0 %v243_v30  ;;  %294 = vmatpush.msra.mxu1 %v244_v31 }
  0x3a   : > { %275 = vmatpush.msra.mxu0 %v241_v32  ;;  %295 = vmatpush.msra.mxu1 %v242_v33 }
  0x3c   : > { %276 = vmatpush.msra.mxu0 %v239_v34  ;;  %296 = vmatpush.msra.mxu1 %v240_v35 }
  0x3d   : > { %418 = vmatmul.msk.f32.vlgmr.msra.gmra.mxu0 %vm257_vm0, %v238_v36  ;;  %419 = vmatmul.msk.f32.vlgmr.msra.gmra.mxu1 %vm257_vm0, %v238_v36 }
  0xba   : > { %v278_v37 = vpop.f32.mrf.mxu0  ;;  %v298_v38 = vpop.f32.mrf.mxu1 }
  0xbb   : > { %301 = vst [vmem:[%s232_s9] sm:$0xff] %v278_v37  ;;  %v303_v39 = vadd.f32 %v298_v38, %v278_v37  ;;  %v308_v40 = vmul.f32 %v278_v37, %v278_v37  ;;  %v309_v41 = vmul.f32 %v298_v38, %v298_v38 }
  0xbc   : > { %302 = vst [vmem:[%s232_s9 + $0x8] sm:$0xff] %v298_v38 }
  0xbd   : > { %304 = vadd.xlane.f32.xlu0 %v303_v39  ;;  %v310_v42 = vadd.f32 %v309_v41, %v308_v40 }
  0xc5   : > { %311 = vadd.xlane.f32.xlu0 %v310_v42 }
 0x130   : > { %v305_v43 = vpop.xlane.xlu0 %304 }
 0x131   : > { %307 = vst.msk [vmem:[%s237_s14] sm:$0xff] %vm306_vm1, %v305_v43 }
 0x138   : > { %v312_v44 = vpop.xlane.xlu0 %311 }
 0x139   : > { %314 = vst.msk [vmem:[%s237_s14] sm:$0xff] %vm313_vm2, %v312_v44 }
 0x13a PF: > { %p11_p10 = scmp.ge.s32.totalorder %s512_s16, 4   ;;  %s618_s12 = smov %s467_s13 }
 0x13b   : > { %s619_s13 = smov %s521_s19  ;;  %s620_s14 = smov %s512_s16 }
 0x13c   :  { %13 = sbr.rel (!%p11_p10) target bundleno = 2 (0x2), region = 98 }

</bundles_post_ra>
